<compile_context>
chip_gen: v6e
topology: v6e:2x2x1
jax: 0.10.0
libtpu: 0.0.40
codegen_flags: <defaults>
</compile_context>

<pallas_src>
import jax
import jax.numpy as jnp
from jax.experimental import pallas as pl
from jax.experimental.pallas import tpu as pltpu


LN_EPS = 1e-5
LEAKY_SLOPE = 0.02

IN_DIM = 784
HID_DIM = 200
HID_PAD = 256          # 2 full 128-lane vregs
OUT_DIM = 10
OUT_PAD = 128          # lane-dense output slab


def _round_up(x, m):
    return (x + m - 1) // m * m


def classifier_kernel(x_ref, w1_ref, b1_ref, w2_ref, b2_ref, o_ref):
    # ---- Linear(784 -> 256 padded): cast x to bf16 in-kernel, f32 accumulate ----
    x = x_ref[...].astype(jnp.bfloat16)                                        # (TM, 784)
    h = jnp.dot(x, w1_ref[...], preferred_element_type=jnp.float32)           # (TM, 256)
    h = h + b1_ref[...]                                                        # f32 bias

    # ---- LeakyReLU(0.02) ----
    h = jnp.where(h >= 0, h, LEAKY_SLOPE * h)

    # ---- LayerNorm over the real 200 features (pad cols of h are exactly zero) ----
    s = jnp.sum(h, axis=-1, keepdims=True)                 # (TM, 1)
    ss = jnp.sum(h * h, axis=-1, keepdims=True)            # (TM, 1)
    mean = s * (1.0 / HID_DIM)
    var = ss * (1.0 / HID_DIM) - mean * mean
    var = jnp.maximum(var, 0.0)                            # guard cancellation
    inv_std = jax.lax.rsqrt(var + LN_EPS)
    hn = (h - mean) * inv_std                              # gamma/beta folded into w2/b2

    # ---- Linear(256 padded -> 128 padded): pad rows of w2' are zero, so the
    #      (nonzero) pad columns of hn contribute nothing ----
    y = jnp.dot(hn.astype(jnp.bfloat16), w2_ref[...],
                preferred_element_type=jnp.float32)        # (TM, 128)
    y = y + b2_ref[...]

    # ---- Sigmoid : exp + reciprocal both ride the EUP slot ----
    o_ref[...] = pl.reciprocal(1.0 + jnp.exp(-y), approx=True).astype(o_ref.dtype)


def preprocess_params(w1, b1, gamma, beta, w2, b2):
    """One-time weight preprocessing: fold LayerNorm affine into the 2nd linear, pad,
    and cast.  Call once and cache; do not re-run per forward."""
    # Fold: ((h-m)/s * gamma + beta) @ w2 + b2 == ((h-m)/s) @ (diag(gamma) @ w2) + (beta @ w2 + b2)
    w2_f = gamma.reshape(-1, 1) * w2                                            # (200, 10)
    b2_f = beta.reshape(1, -1) @ w2 + b2.reshape(1, -1)                          # (1, 10)

    w1_p = jnp.pad(w1, ((0, 0), (0, HID_PAD - HID_DIM))).astype(jnp.bfloat16)    # (784, 256)
    b1_p = jnp.pad(b1.reshape(1, -1),
                   ((0, 0), (0, HID_PAD - HID_DIM))).astype(jnp.float32)         # (1, 256)
    w2_p = jnp.pad(w2_f, ((0, HID_PAD - HID_DIM), (0, OUT_PAD - OUT_DIM))
                   ).astype(jnp.bfloat16)                                        # (256, 128)
    b2_p = jnp.pad(b2_f, ((0, 0), (0, OUT_PAD - OUT_DIM))).astype(jnp.float32)   # (1, 128)
    return w1_p, b1_p, w2_p, b2_p


def classifier_forward_preprocessed(x, w1_p, b1_p, w2_p, b2_p, *,
                                    tile_m=1024, out_dtype=jnp.bfloat16):
    """x: (B, 784) float (f32 or bf16); params from preprocess_params()."""
    B = x.shape[0]

    # Batch tile: multiple of 8 sublanes, at most tile_m, and capped so large batches
    # still produce >= 2 grid steps (v7x megacore).  No batch padding of x: pl.cdiv
    # grid + partial last tile handles the remainder.
    tm = max(8, min(tile_m, _round_up(pl.cdiv(B, 2), 8)))
    grid = (pl.cdiv(B, tm),)

    # Resident (weight-like) operands return block (0, 0) every step; x/out tile over batch.
    resident = lambda shape: pl.BlockSpec(shape, lambda i: (0, 0))

    out = pl.pallas_call(
        classifier_kernel,
        out_shape=jax.ShapeDtypeStruct((B, OUT_PAD), out_dtype),
        grid_spec=pltpu.PrefetchScalarGridSpec(
            num_scalar_prefetch=0,
            grid=grid,
            in_specs=[
                pl.BlockSpec((tm, IN_DIM), lambda i: (i, 0)),   # x tile (pipelined)
                resident((IN_DIM, HID_PAD)),                    # w1
                resident((1, HID_PAD)),                         # b1
                resident((HID_PAD, OUT_PAD)),                   # w2 (gamma folded)
                resident((1, OUT_PAD)),                         # b2 (beta folded)
            ],
            out_specs=pl.BlockSpec((tm, OUT_PAD), lambda i: (i, 0)),
        ),
        compiler_params=pltpu.CompilerParams(
            dimension_semantics=("parallel",),                  # megacore on v7x
        ),
    )(x, w1_p, b1_p, w2_p, b2_p)

    return out[:, :OUT_DIM]


def classifier_forward(x, w1, b1, gamma, beta, w2, b2, *, tile_m=1024,
                       out_dtype=jnp.bfloat16):
    """Convenience wrapper (preprocesses every call; prefer caching preprocess_params)."""
    params = preprocess_params(w1, b1, gamma, beta, w2, b2)
    return classifier_forward_preprocessed(x, *params, tile_m=tile_m, out_dtype=out_dtype)


def init_params(key):
    """Init mimicking PyTorch nn.Linear defaults; non-trivial LayerNorm affine to
    exercise the gamma/beta folding path."""
    k1, k2, k3, k4, k5, k6 = jax.random.split(key, 6)
    lim1 = 1.0 / jnp.sqrt(float(IN_DIM))
    lim2 = 1.0 / jnp.sqrt(float(HID_DIM))
    w1 = jax.random.uniform(k1, (IN_DIM, HID_DIM), jnp.float32, -lim1, lim1)
    b1 = jax.random.uniform(k2, (1, HID_DIM), jnp.float32, -lim1, lim1)
    gamma = 1.0 + 0.1 * jax.random.normal(k5, (1, HID_DIM), jnp.float32)
    beta = 0.1 * jax.random.normal(k6, (1, HID_DIM), jnp.float32)
    w2 = jax.random.uniform(k3, (HID_DIM, OUT_DIM), jnp.float32, -lim2, lim2)
    b2 = jax.random.uniform(k4, (1, OUT_DIM), jnp.float32, -lim2, lim2)
    return w1, b1, gamma, beta, w2, b2


def reference_forward(x, w1, b1, gamma, beta, w2, b2):
    h = x @ w1 + b1
    h = jnp.where(h >= 0, h, LEAKY_SLOPE * h)
    mean = jnp.mean(h, axis=-1, keepdims=True)
    var = jnp.mean((h - mean) ** 2, axis=-1, keepdims=True)
    h = (h - mean) * jax.lax.rsqrt(var + LN_EPS) * gamma + beta
    y = h @ w2 + b2
    return jax.nn.sigmoid(y)


if __name__ == "__main__":
    key = jax.random.PRNGKey(0)
    kx, kp = jax.random.split(key)

    B = 8
    x = jax.random.normal(kx, (B, IN_DIM), jnp.float32)
    params = init_params(kp)

    # One-time weight preprocessing (fold + pad + cast), then the fused kernel.
    pre = preprocess_params(*params)
    out = classifier_forward_preprocessed(x, *pre)
    out = jax.block_until_ready(out)

    ref = reference_forward(x, *params)
    assert out.shape == (B, OUT_DIM)
    # bf16 MXU inputs, bf16 output, approx reciprocal -> loose-ish tolerance.
    assert jnp.allclose(out.astype(jnp.float32), ref, atol=2e-2, rtol=2e-2), \
        "mismatch vs reference"

    print("KERNEL_OK")
</pallas_src>

<mosaic_0001>
module attributes {stable_mosaic.version = 11 : i64} {
  func.func @classifier_kernel(%arg0: i32, %arg1: memref<8x784xf32, #tpu.memory_space<vmem>>, %arg2: memref<784x256xbf16, #tpu.memory_space<vmem>>, %arg3: memref<1x256xf32, #tpu.memory_space<vmem>>, %arg4: memref<256x128xbf16, #tpu.memory_space<vmem>>, %arg5: memref<1x128xf32, #tpu.memory_space<vmem>>, %arg6: memref<8x128xbf16, #tpu.memory_space<vmem>>) attributes {dimension_semantics = [#tpu.dimension_semantics<parallel>], iteration_bounds = array<i64: 1>, scalar_prefetch = 0 : i64, scratch_operands = 0 : i64, tpu.core_type = #tpu.core_type<tc>, window_params = [{transform_indices = @transform_0, window_bounds = array<i64: 8, 784>}, {pipeline_mode = #tpu.pipeline_mode<synchronous>, transform_indices = @transform_1, window_bounds = array<i64: 784, 256>}, {pipeline_mode = #tpu.pipeline_mode<synchronous>, transform_indices = @transform_2, window_bounds = array<i64: 1, 256>}, {pipeline_mode = #tpu.pipeline_mode<synchronous>, transform_indices = @transform_3, window_bounds = array<i64: 256, 128>}, {pipeline_mode = #tpu.pipeline_mode<synchronous>, transform_indices = @transform_4, window_bounds = array<i64: 1, 128>}, {transform_indices = @transform_5, window_bounds = array<i64: 8, 128>}]} {
    %c0 = arith.constant 0 : index
    %c0_0 = arith.constant 0 : index
    %0 = vector.load %arg1[%c0, %c0_0] : memref<8x784xf32, #tpu.memory_space<vmem>>, vector<8x784xf32>
    %1 = arith.truncf %0 : vector<8x784xf32> to vector<8x784xbf16>
    %c0_1 = arith.constant 0 : index
    %c0_2 = arith.constant 0 : index
    %2 = vector.load %arg2[%c0_1, %c0_2] : memref<784x256xbf16, #tpu.memory_space<vmem>>, vector<784x256xbf16>
    %cst = arith.constant dense<0.000000e+00> : vector<8x256xf32>
    %3 = tpu.matmul %1, %2, %cst {dimension_numbers = #tpu.dot_dimension_numbers<[1], [0], [0], [1], [0, 0, 1, 1], [], []>} : vector<8x784xbf16>, vector<784x256xbf16>, vector<8x256xf32> -> vector<8x256xf32>
    %c0_3 = arith.constant 0 : index
    %c0_4 = arith.constant 0 : index
    %4 = vector.load %arg3[%c0_3, %c0_4] : memref<1x256xf32, #tpu.memory_space<vmem>>, vector<1x256xf32>
    %5 = vector.broadcast %4 : vector<1x256xf32> to vector<8x256xf32>
    %6 = arith.addf %3, %5 : vector<8x256xf32>
    %cst_5 = arith.constant 0.000000e+00 : f32
    %7 = vector.broadcast %cst_5 : f32 to vector<8x256xf32>
    %8 = arith.cmpf oge, %6, %7 : vector<8x256xf32>
    %cst_6 = arith.constant 2.000000e-02 : f32
    %9 = vector.broadcast %cst_6 : f32 to vector<8x256xf32>
    %10 = arith.mulf %9, %6 : vector<8x256xf32>
    %11 = arith.select %8, %6, %10 : vector<8x256xi1>, vector<8x256xf32>
    %cst_7 = arith.constant dense<0.000000e+00> : vector<8xf32>
    %12 = vector.multi_reduction <add>, %11, %cst_7 [1] : vector<8x256xf32> to vector<8xf32>
    %13 = vector.shape_cast %12 : vector<8xf32> to vector<8x1xf32>
    %14 = arith.mulf %11, %11 : vector<8x256xf32>
    %cst_8 = arith.constant dense<0.000000e+00> : vector<8xf32>
    %15 = vector.multi_reduction <add>, %14, %cst_8 [1] : vector<8x256xf32> to vector<8xf32>
    %16 = vector.shape_cast %15 : vector<8xf32> to vector<8x1xf32>
    %cst_9 = arith.constant 5.000000e-03 : f32
    %17 = vector.broadcast %cst_9 : f32 to vector<8x1xf32>
    %18 = arith.mulf %13, %17 : vector<8x1xf32>
    %cst_10 = arith.constant 5.000000e-03 : f32
    %19 = vector.broadcast %cst_10 : f32 to vector<8x1xf32>
    %20 = arith.mulf %16, %19 : vector<8x1xf32>
    %21 = arith.mulf %18, %18 : vector<8x1xf32>
    %22 = arith.subf %20, %21 : vector<8x1xf32>
    %cst_11 = arith.constant 0.000000e+00 : f32
    %23 = vector.broadcast %cst_11 : f32 to vector<8x1xf32>
    %24 = arith.maximumf %22, %23 : vector<8x1xf32>
    %cst_12 = arith.constant 9.99999974E-6 : f32
    %25 = vector.broadcast %cst_12 : f32 to vector<8x1xf32>
    %26 = arith.addf %24, %25 : vector<8x1xf32>
    %27 = math.rsqrt %26 : vector<8x1xf32>
    %28 = vector.broadcast %18 : vector<8x1xf32> to vector<8x256xf32>
    %29 = arith.subf %11, %28 : vector<8x256xf32>
    %30 = vector.broadcast %27 : vector<8x1xf32> to vector<8x256xf32>
    %31 = arith.mulf %29, %30 : vector<8x256xf32>
    %32 = arith.truncf %31 : vector<8x256xf32> to vector<8x256xbf16>
    %c0_13 = arith.constant 0 : index
    %c0_14 = arith.constant 0 : index
    %33 = vector.load %arg4[%c0_13, %c0_14] : memref<256x128xbf16, #tpu.memory_space<vmem>>, vector<256x128xbf16>
    %cst_15 = arith.constant dense<0.000000e+00> : vector<8x128xf32>
    %34 = tpu.matmul %32, %33, %cst_15 {dimension_numbers = #tpu.dot_dimension_numbers<[1], [0], [0], [1], [0, 0, 1, 1], [], []>} : vector<8x256xbf16>, vector<256x128xbf16>, vector<8x128xf32> -> vector<8x128xf32>
    %c0_16 = arith.constant 0 : index
    %c0_17 = arith.constant 0 : index
    %35 = vector.load %arg5[%c0_16, %c0_17] : memref<1x128xf32, #tpu.memory_space<vmem>>, vector<1x128xf32>
    %36 = vector.broadcast %35 : vector<1x128xf32> to vector<8x128xf32>
    %37 = arith.addf %34, %36 : vector<8x128xf32>
    %cst_18 = arith.constant 0.000000e+00 : f32
    %38 = vector.broadcast %cst_18 : f32 to vector<8x128xf32>
    %39 = arith.subf %38, %37 : vector<8x128xf32>
    %40 = math.exp %39 : vector<8x128xf32>
    %cst_19 = arith.constant 1.000000e+00 : f32
    %41 = vector.broadcast %cst_19 : f32 to vector<8x128xf32>
    %42 = arith.addf %41, %40 : vector<8x128xf32>
    %43 = tpu.reciprocal %42 {approx = true} : vector<8x128xf32> -> vector<8x128xf32>
    %44 = arith.truncf %43 : vector<8x128xf32> to vector<8x128xbf16>
    %c0_20 = arith.constant 0 : index
    %c0_21 = arith.constant 0 : index
    %45 = vector.load %arg6[%c0_20, %c0_21] : memref<8x128xbf16, #tpu.memory_space<vmem>>, vector<8x128xbf16>
    tpu.vector_store %arg6[%c0_20, %c0_21], %44 {strides = array<i32>} : memref<8x128xbf16, #tpu.memory_space<vmem>>, vector<8x128xbf16>,
    return
  }
  func.func @transform_0(%arg0: i32) -> (i32, i32) {
    %c0_i32 = arith.constant 0 : i32
    %c0_i32_0 = arith.constant 0 : i32
    return %arg0, %c0_i32 : i32, i32
  }
  func.func @transform_1(%arg0: i32) -> (i32, i32) {
    %c0_i32 = arith.constant 0 : i32
    %c0_i32_0 = arith.constant 0 : i32
    %c0_i32_1 = arith.constant 0 : i32
    return %c0_i32, %c0_i32_0 : i32, i32
  }
  func.func @transform_2(%arg0: i32) -> (i32, i32) {
    %c0_i32 = arith.constant 0 : i32
    %c0_i32_0 = arith.constant 0 : i32
    %c0_i32_1 = arith.constant 0 : i32
    return %c0_i32, %c0_i32_0 : i32, i32
  }
  func.func @transform_3(%arg0: i32) -> (i32, i32) {
    %c0_i32 = arith.constant 0 : i32
    %c0_i32_0 = arith.constant 0 : i32
    %c0_i32_1 = arith.constant 0 : i32
    return %c0_i32, %c0_i32_0 : i32, i32
  }
  func.func @transform_4(%arg0: i32) -> (i32, i32) {
    %c0_i32 = arith.constant 0 : i32
    %c0_i32_0 = arith.constant 0 : i32
    %c0_i32_1 = arith.constant 0 : i32
    return %c0_i32, %c0_i32_0 : i32, i32
  }
  func.func @transform_5(%arg0: i32) -> (i32, i32) {
    %c0_i32 = arith.constant 0 : i32
    %c0_i32_0 = arith.constant 0 : i32
    return %arg0, %c0_i32 : i32, i32
  }
}

</mosaic_0001>

<bundles_post_ra>
// kernel: tpu_custom_call.1
= control target key start
LH: loop header
LB: loop body
LE: loop exit
PB: predicated region body
PF: predicated region fallthrough
CT: control target
= control target key end

     0   :  { %10 = vsyncpa [#allocation3], 0  ;;  %s1528_s0 = inlined_call_operand.hbm [shape: f32[8,784], index: 0, kind: input, shape index: {}]   ;;  %s1529_s1 = inlined_call_operand.hbm [shape: bf16[784,256], index: 1, kind: input, shape index: {}]   ;;  %s1530_s2 = inlined_call_operand.vmem [shape: f32[1,256], index: 2, kind: input, shape index: {}]   ;;  %s1531_s3 = inlined_call_operand.hbm [shape: bf16[256,128], index: 3, kind: input, shape index: {}]   ;;  %s1532_s4 = inlined_call_operand.vmem [shape: f32[1,128], index: 4, kind: input, shape index: {}]   ;;  %s1533_s5 = inlined_call_operand.hbm [shape: bf16[8,128], index: 5, kind: output, shape index: {}]  }
   0x1   :  { %11 = vsyncpa [#allocation6], 0 }
   0x2   :  { %12 = vsyncpa [#allocation4], 0  ;;  %s1470_s18 = smov [#allocation5]  }
   0x3   :  { %s28_s19 = sshll.u32 %s1470_s18, 4  ;;  %s29_s19 = int_to_ptr.vmem [resolvable:$true] %s28_s19 }
   0x4   :  { %s1392_s20 = scalar_lea.vmem %s29_s19, 12544  ;;  %p1397_p1 = scmp.lt.s32.totalorder %s29_s19, %s29_s19 }
   0x5   :  { %p1393_p0 = scmp.ne.s32.totalorder %s29_s19, %s1392_s20  ;;  %p1398_p2 = scmp.lt.s32.totalorder %s1392_s20, %s1392_s20 }
   0x7   :  { %p1399_p3 = por %p1398_p2, %p1397_p1 }
   0x9   :  { %p1400_p4 = pnand %p1399_p3, %p1393_p0 }
   0xb   :  { %1403 = shalt.err (!%p1400_p4)
}
   0xc   :  { %s1471_s21 = smov 128   ;;  %s1472_s22 = smov 8  }
   0xd   :  { %34 = dma.hbm_to_vmem [thread:$0]  %s1529_s1, 12544, %s29_s19, [#allocation6], %s1471_s21, %s1471_s21, %s1472_s22  }
   0xe   :  { %s1473_s25 = smov [#allocation2]   ;;  %s1474_s27 = smov [#allocation7]  }
   0xf   :  { %s19_s26 = sshll.u32 %s1473_s25, 4  ;;  %s42_s28 = sshll.u32 %s1474_s27, 4  ;;  %s20_s26 = int_to_ptr.vmem [resolvable:$true] %s19_s26  ;;  %s43_s28 = int_to_ptr.vmem [resolvable:$true] %s42_s28 }
  0x10   :  { %s1412_s29 = scalar_lea.vmem %s20_s26, 896  ;;  %p1417_p6 = scmp.lt.s32.totalorder %s20_s26, %s20_s26 }
  0x11   :  { %p1413_p5 = scmp.ne.s32.totalorder %s20_s26, %s1412_s29  ;;  %p1418_p7 = scmp.lt.s32.totalorder %s1412_s29, %s1412_s29 }
  0x13   :  { %p1419_p8 = por %p1418_p7, %p1417_p6 }
  0x15   :  { %p1420_p9 = pnand %p1419_p8, %p1413_p5 }
  0x17   :  { %1423 = shalt.err (!%p1420_p9)
}
  0x18   :  { %22 = dma.hbm_to_vmem [thread:$0]  %s1528_s0, 896, %s20_s26, [#allocation3]  }
  0x19   :  { %s1432_s7 = scalar_lea.vmem %s43_s28, 2048  ;;  %p1437_p11 = scmp.lt.s32.totalorder %s43_s28, %s43_s28 }
  0x1a   :  { %p1433_p10 = scmp.ne.s32.totalorder %s43_s28, %s1432_s7  ;;  %p1438_p12 = scmp.lt.s32.totalorder %s1432_s7, %s1432_s7 }
  0x1c   :  { %p1439_p13 = por %p1438_p12, %p1437_p11 }
  0x1e   :  { %p1440_p0 = pnand %p1439_p13, %p1433_p10 }
  0x20   :  { %1443 = shalt.err (!%p1440_p0)
}
  0x21   :  { %s1475_s1 = smov 64   ;;  %s1476_s8 = smov 4  }
  0x22   :  { %48 = dma.hbm_to_vmem [thread:$0]  %s1531_s3, 2048, %s43_s28, [#allocation6], %s1475_s1, %s1475_s1, %s1476_s8  }
  0x23   :  { %1464 = dma.done.wait [#allocation3], 896  }
  0x24   :  { %1465 = vsyncadd [#allocation3], 4294966400 }
  0x25   :  { %1466 = dma.done.wait [#allocation6], 14592  }
  0x26   :  { %1467 = vsyncadd [#allocation6], 4294952704  ;;  %v1215_v0 = vld [vmem:[#allocation5 + $0x74] ss:$8 sps:$4 sm:$0xff]   ;;  %v1217_v1 = vld [vmem:[#allocation5 + $0x70] ss:$8 sps:$4 sm:$0xff]  }
  0x27   :  { %679 = vmatprep.subr.bf16.mxu0 %v1215_v0  ;;  %v1218_v2 = vld [vmem:[#allocation5 + $0x174] ss:$8 sps:$4 sm:$0xff]   ;;  %v1220_v3 = vld [vmem:[#allocation5 + $0x170] ss:$8 sps:$4 sm:$0xff]   ;;  %v1221_v4 = vld [vmem:[#allocation5 + $0x64] ss:$8 sps:$4 sm:$0xff]  }
  0x28   :  { %680 = vmatpush1.bf16.msra.mxu0 %v1217_v1  ;;  %v1223_v5 = vld [vmem:[#allocation5 + $0x60] ss:$8 sps:$4 sm:$0xff]   ;;  %720 = vmatprep.subr.bf16.mxu1 %v1218_v2  ;;  %v1224_v6 = vld [vmem:[#allocation5 + $0x164] ss:$8 sps:$4 sm:$0xff]   ;;  %v1227_v8 = vld [vmem:[#allocation5 + $0x54] ss:$8 sps:$4 sm:$0xff]  }
  0x29   :  { %721 = vmatpush1.bf16.msra.mxu1 %v1220_v3  ;;  %681 = vmatprep.subr.bf16.mxu0 %v1221_v4  ;;  %v1226_v7 = vld [vmem:[#allocation5 + $0x160] ss:$8 sps:$4 sm:$0xff]   ;;  %v1229_v9 = vld [vmem:[#allocation5 + $0x50] ss:$8 sps:$4 sm:$0xff]   ;;  %v1230_v10 = vld [vmem:[#allocation5 + $0x154] ss:$8 sps:$4 sm:$0xff]  }
  0x2a   :  { %722 = vmatprep.subr.bf16.mxu1 %v1224_v6  ;;  %v1233_v11 = vld [vmem:[#allocation5 + $0x44] ss:$8 sps:$4 sm:$0xff]   ;;  %v1232_v12 = vld [vmem:[#allocation5 + $0x150] ss:$8 sps:$4 sm:$0xff]   ;;  %v1235_v14 = vld [vmem:[#allocation5 + $0x40] ss:$8 sps:$4 sm:$0xff]  }
  0x2b   :  { %v1236_v13 = vld [vmem:[#allocation5 + $0x144] ss:$8 sps:$4 sm:$0xff]   ;;  %v1239_v15 = vld [vmem:[#allocation5 + $0x34] ss:$8 sps:$4 sm:$0xff]   ;;  %v1238_v16 = vld [vmem:[#allocation5 + $0x140] ss:$8 sps:$4 sm:$0xff]  }
  0x2c   :  { %682 = vmatpush1.bf16.msra.mxu0 %v1223_v5  ;;  %v1242_v17 = vld [vmem:[#allocation5 + $0x134] ss:$8 sps:$4 sm:$0xff]   ;;  %v1241_v18 = vld [vmem:[#allocation5 + $0x30] ss:$8 sps:$4 sm:$0xff]   ;;  %v1245_v19 = vld [vmem:[#allocation5 + $0x24] ss:$8 sps:$4 sm:$0xff]  }
  0x2d   :  { %683 = vmatprep.subr.bf16.mxu0 %v1227_v8  ;;  %723 = vmatpush1.bf16.msra.mxu1 %v1226_v7  ;;  %v1244_v20 = vld [vmem:[#allocation5 + $0x130] ss:$8 sps:$4 sm:$0xff]   ;;  %v1248_v21 = vld [vmem:[#allocation5 + $0x124] ss:$8 sps:$4 sm:$0xff]   ;;  %v1247_v22 = vld [vmem:[#allocation5 + $0x20] ss:$8 sps:$4 sm:$0xff]  }
  0x2e   :  { %724 = vmatprep.subr.bf16.mxu1 %v1230_v10  ;;  %v1251_v23 = vld [vmem:[#allocation5 + $0x14] ss:$8 sps:$4 sm:$0xff]   ;;  %v1250_v24 = vld [vmem:[#allocation5 + $0x120] ss:$8 sps:$4 sm:$0xff]   ;;  %v1253_v26 = vld [vmem:[#allocation5 + $0x10] ss:$8 sps:$4 sm:$0xff]  }
  0x2f   :  { %v1254_v25 = vld [vmem:[#allocation5 + $0x114] ss:$8 sps:$4 sm:$0xff]   ;;  %v1257_v27 = vld [vmem:[#allocation5 + $0x4] ss:$8 sps:$4 sm:$0xff]   ;;  %v1256_v28 = vld [vmem:[#allocation5 + $0x110] ss:$8 sps:$4 sm:$0xff]  }
  0x30   :  { %684 = vmatpush1.bf16.msra.mxu0 %v1229_v9  ;;  %v1260_v29 = vld [vmem:[#allocation5 + $0x104] ss:$8 sps:$4 sm:$0xff]   ;;  %v1259_v30 = vld [vmem:[#allocation5] ss:$8 sps:$4 sm:$0xff]   ;;  %v1263_v31 = vld [vmem:[#allocation5 + $0xf4] ss:$8 sps:$4 sm:$0xff]  }
  0x31   :  { %685 = vmatprep.subr.bf16.mxu0 %v1233_v11  ;;  %725 = vmatpush1.bf16.msra.mxu1 %v1232_v12  ;;  %v1262_v32 = vld [vmem:[#allocation5 + $0x100] ss:$8 sps:$4 sm:$0xff]   ;;  %v1266_v33 = vld [vmem:[#allocation5 + $0x1f4] ss:$8 sps:$4 sm:$0xff]   ;;  %v1265_v34 = vld [vmem:[#allocation5 + $0xf0] ss:$8 sps:$4 sm:$0xff]  }
  0x32   :  { %726 = vmatprep.subr.bf16.mxu1 %v1236_v13  ;;  %v1269_v35 = vld [vmem:[#allocation5 + $0xe4] ss:$8 sps:$4 sm:$0xff]   ;;  %v1268_v36 = vld [vmem:[#allocation5 + $0x1f0] ss:$8 sps:$4 sm:$0xff]   ;;  %v1271_v38 = vld [vmem:[#allocation5 + $0xe0] ss:$8 sps:$4 sm:$0xff]  }
  0x33   :  { %v1272_v37 = vld [vmem:[#allocation5 + $0x1e4] ss:$8 sps:$4 sm:$0xff]   ;;  %v1275_v39 = vld [vmem:[#allocation5 + $0xd4] ss:$8 sps:$4 sm:$0xff]   ;;  %v1274_v40 = vld [vmem:[#allocation5 + $0x1e0] ss:$8 sps:$4 sm:$0xff]  }
  0x34   :  { %686 = vmatpush1.bf16.msra.mxu0 %v1235_v14  ;;  %v1278_v41 = vld [vmem:[#allocation5 + $0x1d4] ss:$8 sps:$4 sm:$0xff]   ;;  %v1277_v42 = vld [vmem:[#allocation5 + $0xd0] ss:$8 sps:$4 sm:$0xff]   ;;  %v1281_v43 = vld [vmem:[#allocation5 + $0xc4] ss:$8 sps:$4 sm:$0xff]  }
  0x35   :  { %687 = vmatprep.subr.bf16.mxu0 %v1239_v15  ;;  %727 = vmatpush1.bf16.msra.mxu1 %v1238_v16  ;;  %v1280_v44 = vld [vmem:[#allocation5 + $0x1d0] ss:$8 sps:$4 sm:$0xff]   ;;  %v1284_v45 = vld [vmem:[#allocation5 + $0x1c4] ss:$8 sps:$4 sm:$0xff]   ;;  %v1283_v47 = vld [vmem:[#allocation5 + $0xc0] ss:$8 sps:$4 sm:$0xff]  }
  0x36   :  { %728 = vmatprep.subr.bf16.mxu1 %v1242_v17  ;;  %v62_v46 = vld [vmem:[#allocation2 + $0x8] sm:$0xff]  ;;  %v64_v50 = vld [vmem:[#allocation2 + $0x18] sm:$0xff]  ;;  %v61_v4 = vld [vmem:[#allocation2] sm:$0xff]  ;;  %vm675_vm0 = vcmask 130048   ;;  %s1478_s12 = smov [#allocation8]  }
  0x37   :  { %v69_v48 = vpack.c.bf16 %v62_v46, %v62_v46  ;;  %v1287_v49 = vld [vmem:[#allocation5 + $0xb4] ss:$8 sps:$4 sm:$0xff]   ;;  %v1286_v51 = vld [vmem:[#allocation5 + $0x1c0] ss:$8 sps:$4 sm:$0xff]   ;;  %v71_v52 = vpack.c.bf16 %v64_v50, %v64_v50  ;;  %v1289_v54 = vld [vmem:[#allocation5 + $0xb0] ss:$8 sps:$4 sm:$0xff]   ;;  %v68_v7 = vpack.c.bf16 %v61_v4, %v61_v4 }
  0x38   :  { %688 = vmatpush1.bf16.msra.mxu0 %v1241_v18  ;;  %v1290_v53 = vld [vmem:[#allocation5 + $0x1b4] ss:$8 sps:$4 sm:$0xff]   ;;  %v1293_v55 = vld [vmem:[#allocation5 + $0xa4] ss:$8 sps:$4 sm:$0xff]   ;;  %v1292_v56 = vld [vmem:[#allocation5 + $0x1b0] ss:$8 sps:$4 sm:$0xff]  }
  0x39   :  { %689 = vmatprep.subr.bf16.mxu0 %v1245_v19  ;;  %729 = vmatpush1.bf16.msra.mxu1 %v1244_v20  ;;  %v1296_v57 = vld [vmem:[#allocation5 + $0x1a4] ss:$8 sps:$4 sm:$0xff]   ;;  %v1295_v58 = vld [vmem:[#allocation5 + $0xa0] ss:$8 sps:$4 sm:$0xff]   ;;  %v1299_v59 = vld [vmem:[#allocation5 + $0x94] ss:$8 sps:$4 sm:$0xff]  }
  0x3a   :  { %730 = vmatprep.subr.bf16.mxu1 %v1248_v21  ;;  %711 = vmatprep.mubr.bf16.mxu0 %v69_v48  ;;  %v1298_v60 = vld [vmem:[#allocation5 + $0x1a0] ss:$8 sps:$4 sm:$0xff]   ;;  %v1302_v61 = vld [vmem:[#allocation5 + $0x194] ss:$8 sps:$4 sm:$0xff]   ;;  %v1301_v62 = vld [vmem:[#allocation5 + $0x90] ss:$8 sps:$4 sm:$0xff]  }
  0x3b   :  { %752 = vmatprep.mubr.bf16.mxu1 %v71_v52  ;;  %v1305_v63 = vld [vmem:[#allocation5 + $0x84] ss:$8 sps:$4 sm:$0xff]   ;;  %v1304_v0 = vld [vmem:[#allocation5 + $0x190] ss:$8 sps:$4 sm:$0xff]   ;;  %v1307_v1 = vld [vmem:[#allocation5 + $0x80] ss:$8 sps:$4 sm:$0xff]  }
  0x3c   :  { %690 = vmatpush1.bf16.msra.mxu0 %v1247_v22  ;;  %v1308_v2 = vld [vmem:[#allocation5 + $0x184] ss:$8 sps:$4 sm:$0xff]   ;;  %v1310_v3 = vld [vmem:[#allocation5 + $0x180] ss:$8 sps:$4 sm:$0xff]   ;;  %v1313_v5 = vld [vmem:[#allocation5 + $0x274] ss:$8 sps:$4 sm:$0xff]  }
  0x3d   :  { %691 = vmatprep.subr.bf16.mxu0 %v1251_v23  ;;  %731 = vmatpush1.bf16.msra.mxu1 %v1250_v24  ;;  %v63_v6 = vld [vmem:[#allocation2 + $0x10] sm:$0xff]  ;;  %v1316_v9 = vld [vmem:[#allocation5 + $0x264] ss:$8 sps:$4 sm:$0xff]   ;;  %v1356_v11 = vld [vmem:[#allocation5 + $0x300] ss:$8 sps:$4 sm:$0xff]   ;;  %v1477_v19 = vmov 0  }
  0x3e   :  { %732 = vmatprep.subr.bf16.mxu1 %v1254_v25  ;;  %v1311_v8 = vld [vmem:[#allocation5 + $0x270] ss:$8 sps:$4 sm:$0xff]   ;;  %v70_v10 = vpack.c.bf16 %v63_v6, %v63_v6  ;;  %v1358_v12 = vld [vmem:[#allocation5 + $0x304] ss:$8 sps:$4 sm:$0xff]   ;;  %v1314_v13 = vld [vmem:[#allocation5 + $0x260] ss:$8 sps:$4 sm:$0xff]  }
  0x3f   :  { %v1319_v14 = vld [vmem:[#allocation5 + $0x254] ss:$8 sps:$4 sm:$0xff]   ;;  %v1317_v18 = vld [vmem:[#allocation5 + $0x250] ss:$8 sps:$4 sm:$0xff]   ;;  %v1322_v20 = vld [vmem:[#allocation5 + $0x244] ss:$8 sps:$4 sm:$0xff]  }
  0x40   :  { %692 = vmatpush1.bf16.msra.mxu0 %v1253_v26  ;;  %v67_v15 = vld [vmem:[#allocation2 + $0x30] sm:$0xff]  ;;  %v66_v16 = vld [vmem:[#allocation2 + $0x28] sm:$0xff]  ;;  %v1320_v22 = vld [vmem:[#allocation5 + $0x240] ss:$8 sps:$4 sm:$0xff]   ;;  %s1058_s13 = sshll.u32 %s1478_s12, 4  ;;  %s1059_s13 = int_to_ptr.vmem [resolvable:$true] %s1058_s13 }
  0x41   :  { %693 = vmatprep.subr.bf16.mxu0 %v1257_v27  ;;  %733 = vmatpush1.bf16.msra.mxu1 %v1256_v28  ;;  %v73_v17 = vpack.c.bf16 %v66_v16, %v66_v16  ;;  %v74_v21 = vpack.c.bf16 %v67_v15, %v67_v15  ;;  %v1325_v23 = vld [vmem:[#allocation5 + $0x234] ss:$8 sps:$4 sm:$0xff]   ;;  %v1323_v24 = vld [vmem:[#allocation5 + $0x230] ss:$8 sps:$4 sm:$0xff]   ;;  %v1328_v25 = vld [vmem:[#allocation5 + $0x224] ss:$8 sps:$4 sm:$0xff]   ;;  %p1449_p2 = scmp.lt.s32.totalorder %s1059_s13, %s1059_s13 }
  0x42   :  { %734 = vmatprep.subr.bf16.mxu1 %v1260_v29  ;;  %v1326_v26 = vld [vmem:[#allocation5 + $0x220] ss:$8 sps:$4 sm:$0xff]   ;;  %v1331_v27 = vld [vmem:[#allocation5 + $0x214] ss:$8 sps:$4 sm:$0xff]   ;;  %v1329_v28 = vld [vmem:[#allocation5 + $0x210] ss:$8 sps:$4 sm:$0xff]  }
  0x43   :  { %v1334_v29 = vld [vmem:[#allocation5 + $0x204] ss:$8 sps:$4 sm:$0xff]   ;;  %v1359_v46 = vld [vmem:[#allocation5 + $0x280] ss:$8 sps:$4 sm:$0xff]   ;;  %s1444_s14 = scalar_lea.vmem %s1059_s13, 64 }
  0x44   :  { %694 = vmatpush1.bf16.msra.mxu0 %v1259_v30  ;;  %v1332_v30 = vld [vmem:[#allocation5 + $0x200] ss:$8 sps:$4 sm:$0xff]   ;;  %p1445_p1 = scmp.ne.s32.totalorder %s1059_s13, %s1444_s14  ;;  %p1450_p3 = scmp.lt.s32.totalorder %s1444_s14, %s1444_s14 }
  0x45   :  { %695 = vmatprep.subr.bf16.mxu0 %v1263_v31  ;;  %735 = vmatpush1.bf16.msra.mxu1 %v1262_v32  ;;  %v1337_v31 = vld [vmem:[#allocation5 + $0x2f4] ss:$8 sps:$4 sm:$0xff]   ;;  %v1335_v32 = vld [vmem:[#allocation5 + $0x2f0] ss:$8 sps:$4 sm:$0xff]  }
  0x46   :  { %736 = vmatprep.subr.bf16.mxu1 %v1266_v33  ;;  %v1340_v33 = vld [vmem:[#allocation5 + $0x2e4] ss:$8 sps:$4 sm:$0xff]   ;;  %p1451_p4 = por %p1450_p3, %p1449_p2 }
  0x48   :  { %696 = vmatpush2.bf16.msra.mxu0 %v1265_v34  ;;  %v1338_v34 = vld [vmem:[#allocation5 + $0x2e0] ss:$8 sps:$4 sm:$0xff]   ;;  %p1452_p5 = pnand %p1451_p4, %p1445_p1 }
  0x49   :  { %697 = vmatprep.subr.bf16.mxu0 %v1269_v35  ;;  %737 = vmatpush2.bf16.msra.mxu1 %v1268_v36  ;;  %v1343_v35 = vld [vmem:[#allocation5 + $0x2d4] ss:$8 sps:$4 sm:$0xff]   ;;  %v1341_v36 = vld [vmem:[#allocation5 + $0x2d0] ss:$8 sps:$4 sm:$0xff]  }
  0x4a   :  { %738 = vmatprep.subr.bf16.mxu1 %v1272_v37  ;;  %v1346_v37 = vld [vmem:[#allocation5 + $0x2c4] ss:$8 sps:$4 sm:$0xff]  }
  0x4c   :  { %698 = vmatpush2.bf16.msra.mxu0 %v1271_v38  ;;  %v1344_v38 = vld [vmem:[#allocation5 + $0x2c0] ss:$8 sps:$4 sm:$0xff]  }
  0x4d   :  { %699 = vmatprep.subr.bf16.mxu0 %v1275_v39  ;;  %739 = vmatpush2.bf16.msra.mxu1 %v1274_v40  ;;  %v1349_v39 = vld [vmem:[#allocation5 + $0x2b4] ss:$8 sps:$4 sm:$0xff]   ;;  %v1347_v40 = vld [vmem:[#allocation5 + $0x2b0] ss:$8 sps:$4 sm:$0xff]  }
  0x4e   :  { %740 = vmatprep.subr.bf16.mxu1 %v1278_v41  ;;  %v1352_v41 = vld [vmem:[#allocation5 + $0x2a4] ss:$8 sps:$4 sm:$0xff]  }
  0x50   :  { %700 = vmatpush2.bf16.msra.mxu0 %v1277_v42  ;;  %v1350_v42 = vld [vmem:[#allocation5 + $0x2a0] ss:$8 sps:$4 sm:$0xff]  }
  0x51   :  { %701 = vmatprep.subr.bf16.mxu0 %v1281_v43  ;;  %741 = vmatpush2.bf16.msra.mxu1 %v1280_v44  ;;  %v1355_v43 = vld [vmem:[#allocation5 + $0x294] ss:$8 sps:$4 sm:$0xff]   ;;  %v1353_v44 = vld [vmem:[#allocation5 + $0x290] ss:$8 sps:$4 sm:$0xff]  }
  0x52   :  { %742 = vmatprep.subr.bf16.mxu1 %v1284_v45  ;;  %v1361_v45 = vld [vmem:[#allocation5 + $0x284] ss:$8 sps:$4 sm:$0xff]  }
  0x54   :  { %702 = vmatpush2.bf16.msra.mxu0 %v1283_v47  ;;  %v65_v47 = vld [vmem:[#allocation2 + $0x20] sm:$0xff] }
  0x55   :  { %703 = vmatprep.subr.bf16.mxu0 %v1287_v49  ;;  %743 = vmatpush2.bf16.msra.mxu1 %v1286_v51  ;;  %v72_v48 = vpack.c.bf16 %v65_v47, %v65_v47  ;;  %v1362_v49 = vld [vmem:[#allocation7 + $0x78] sm:$0xff]  }
  0x56   :  { %744 = vmatprep.subr.bf16.mxu1 %v1290_v53 }
  0x58   :  { %704 = vmatpush2.bf16.msra.mxu0 %v1289_v54 }
  0x59   :  { %705 = vmatprep.subr.bf16.mxu0 %v1293_v55  ;;  %745 = vmatpush2.bf16.msra.mxu1 %v1292_v56 }
  0x5a   :  { %746 = vmatprep.subr.bf16.mxu1 %v1296_v57 }
  0x5c   :  { %706 = vmatpush2.bf16.msra.mxu0 %v1295_v58 }
  0x5d   :  { %707 = vmatprep.subr.bf16.mxu0 %v1299_v59  ;;  %747 = vmatpush2.bf16.msra.mxu1 %v1298_v60 }
  0x5e   :  { %748 = vmatprep.subr.bf16.mxu1 %v1302_v61 }
  0x60   :  { %708 = vmatpush2.bf16.msra.mxu0 %v1301_v62  ;;  %v175_v62 = vlaneseq }
  0x61   :  { %709 = vmatprep.subr.bf16.mxu0 %v1305_v63  ;;  %749 = vmatpush2.bf16.msra.mxu1 %v1304_v0 }
  0x62   :  { %750 = vmatprep.subr.bf16.mxu1 %v1308_v2  ;;  %v176_v63 = vshrl.u32 %v175_v62, 7 }
  0x64   :  { %710 = vmatpush2.bf16.msra.mxu0 %v1307_v1  ;;  %v177_v0 = vsub.s32 0, %v176_v63  ;;  %v173_v1 = vld [vmem:[%s1530_s2] sm:$0x3]  ;;  %v181_v2 = vsub.s32 1, %v176_v63 }
  0x65   :  { %761 = vmatprep.subr.bf16.mxu0 %v1313_v5  ;;  %751 = vmatpush2.bf16.msra.mxu1 %v1310_v3 }
  0x66   :  { %816 = vmatprep.subr.bf16.mxu1 %v1358_v12  ;;  %v178_v3 = vrot.slane %v173_v1, %v177_v0  ;;  %v182_v4 = vrot.slane %v173_v1, %v181_v2 }
  0x67   :  { %712 = vmatmul.mubr.bf16.vlgmr.msra.gmra.mxu0 %v68_v7 }
  0x68   :  { %762 = vmatpush1.bf16.msra.mxu0 %v1311_v8  ;;  %753 = vmatmul.mubr.bf16.vlgmr.msra.gmra.mxu1 %v70_v10 }
  0x69   :  { %763 = vmatprep.subr.bf16.mxu0 %v1316_v9  ;;  %817 = vmatpush1.bf16.msra.mxu1 %v1356_v11 }
  0x6a   :  { %834 = vmatprep.mubr.bf16.mxu1 %v1477_v19  ;;  %793 = vmatprep.mubr.bf16.mxu0 %v73_v17 }
  0x6b   :  { %1184 = vmatprep.subr.bf16.mxu1 %v1362_v49 }
  0x6c   :  { %764 = vmatpush1.bf16.msra.mxu0 %v1314_v13 }
  0x6d   :  { %765 = vmatprep.subr.bf16.mxu0 %v1319_v14 }
  0x70   :  { %766 = vmatpush1.bf16.msra.mxu0 %v1317_v18  ;;  %1166 = vmatmul.mubr.msk.bf16.vlgmr.msra.gmra.mxu1 %vm675_vm0, %v74_v21 }
  0x71   :  { %767 = vmatprep.subr.bf16.mxu0 %v1322_v20 }
  0x74   :  { %768 = vmatpush1.bf16.msra.mxu0 %v1320_v22 }
  0x75   :  { %769 = vmatprep.subr.bf16.mxu0 %v1325_v23 }
  0x78   :  { %770 = vmatpush1.bf16.msra.mxu0 %v1323_v24 }
  0x79   :  { %771 = vmatprep.subr.bf16.mxu0 %v1328_v25  ;;  %v1363_v25 = vld [vmem:[#allocation7 + $0x38] sm:$0xff]  }
  0x7a   :  { %1185 = vmatpush3.bf16.msra.mxu1 %v1363_v25 }
  0x7c   :  { %772 = vmatpush1.bf16.msra.mxu0 %v1326_v26  ;;  %v1364_v26 = vld [vmem:[#allocation7 + $0x70] sm:$0xff]  }
  0x7d   :  { %773 = vmatprep.subr.bf16.mxu0 %v1331_v27  ;;  %v1365_v27 = vld [vmem:[#allocation7 + $0x30] sm:$0xff]   ;;  %1186 = vmatprep.subr.bf16.mxu1 %v1364_v26 }
  0x7e   :  { %1187 = vmatpush3.bf16.msra.mxu1 %v1365_v27 }
  0x80   :  { %774 = vmatpush1.bf16.msra.mxu0 %v1329_v28  ;;  %v1366_v28 = vld [vmem:[#allocation7 + $0x68] sm:$0xff]  }
  0x81   :  { %775 = vmatprep.subr.bf16.mxu0 %v1334_v29  ;;  %v1367_v29 = vld [vmem:[#allocation7 + $0x28] sm:$0xff]   ;;  %1188 = vmatprep.subr.bf16.mxu1 %v1366_v28 }
  0x82   :  { %1189 = vmatpush3.bf16.msra.mxu1 %v1367_v29 }
  0x84   :  { %776 = vmatpush1.bf16.msra.mxu0 %v1332_v30  ;;  %v1368_v30 = vld [vmem:[#allocation7 + $0x60] sm:$0xff]  }
  0x85   :  { %777 = vmatprep.subr.bf16.mxu0 %v1337_v31  ;;  %v1369_v31 = vld [vmem:[#allocation7 + $0x20] sm:$0xff]   ;;  %1190 = vmatprep.subr.bf16.mxu1 %v1368_v30 }
  0x86   :  { %1191 = vmatpush3.bf16.msra.mxu1 %v1369_v31 }
  0x88   :  { %778 = vmatpush2.bf16.msra.mxu0 %v1335_v32  ;;  %v1370_v32 = vld [vmem:[#allocation7 + $0x58] sm:$0xff]  }
  0x89   :  { %779 = vmatprep.subr.bf16.mxu0 %v1340_v33  ;;  %v1371_v33 = vld [vmem:[#allocation7 + $0x18] sm:$0xff]   ;;  %1192 = vmatprep.subr.bf16.mxu1 %v1370_v32 }
  0x8a   :  { %1193 = vmatpush3.bf16.msra.mxu1 %v1371_v33 }
  0x8c   :  { %780 = vmatpush2.bf16.msra.mxu0 %v1338_v34  ;;  %v1372_v34 = vld [vmem:[#allocation7 + $0x50] sm:$0xff]  }
  0x8d   :  { %781 = vmatprep.subr.bf16.mxu0 %v1343_v35  ;;  %v1373_v35 = vld [vmem:[#allocation7 + $0x10] sm:$0xff]   ;;  %1194 = vmatprep.subr.bf16.mxu1 %v1372_v34 }
  0x8e   :  { %1195 = vmatpush3.bf16.msra.mxu1 %v1373_v35 }
  0x90   :  { %782 = vmatpush2.bf16.msra.mxu0 %v1341_v36  ;;  %v1374_v36 = vld [vmem:[#allocation7 + $0x48] sm:$0xff]  }
  0x91   :  { %783 = vmatprep.subr.bf16.mxu0 %v1346_v37  ;;  %v1375_v37 = vld [vmem:[#allocation7 + $0x8] sm:$0xff]   ;;  %1196 = vmatprep.subr.bf16.mxu1 %v1374_v36 }
  0x92   :  { %1197 = vmatpush3.bf16.msra.mxu1 %v1375_v37 }
  0x94   :  { %784 = vmatpush2.bf16.msra.mxu0 %v1344_v38  ;;  %v1376_v38 = vld [vmem:[#allocation7 + $0x40] sm:$0xff]  }
  0x95   :  { %785 = vmatprep.subr.bf16.mxu0 %v1349_v39  ;;  %v1377_v39 = vld [vmem:[#allocation7] sm:$0xff]   ;;  %1198 = vmatprep.subr.bf16.mxu1 %v1376_v38 }
  0x96   :  { %1199 = vmatpush3.bf16.msra.mxu1 %v1377_v39 }
  0x98   :  { %786 = vmatpush2.bf16.msra.mxu0 %v1347_v40 }
  0x99   :  { %787 = vmatprep.subr.bf16.mxu0 %v1352_v41 }
  0x9c   :  { %788 = vmatpush2.bf16.msra.mxu0 %v1350_v42 }
  0x9d   :  { %789 = vmatprep.subr.bf16.mxu0 %v1355_v43 }
  0xa0   :  { %790 = vmatpush2.bf16.msra.mxu0 %v1353_v44 }
  0xa1   :  { %791 = vmatprep.subr.bf16.mxu0 %v1361_v45 }
  0xa4   :  { %792 = vmatpush2.bf16.msra.mxu0 %v1359_v46 }
  0xa7   :  { %794 = vmatmul.mubr.bf16.vlgmr.msra.gmra.mxu0 %v72_v48 }
 0x127   :  { %v713_v50 = vpop.f32.mrf.mxu0 }
 0x128   :  { %v754_v52 = vpop.f32.mrf.mxu1  ;;  %v714_v5 = vadd.f32 %v713_v50, %v178_v3 }
 0x129   :  { %v715_v51 = vpop.f32.mrf.mxu0 }
 0x12a   :  { %v756_v54 = vpop.f32.mrf.mxu1  ;;  %v716_v6 = vadd.f32 %v715_v51, %v182_v4  ;;  %v755_v7 = vadd.f32 %v754_v52, %v714_v5 }
 0x12b   :  { %v717_v53 = vpop.f32.mrf.mxu0 }
 0x12c   :  { %v758_v56 = vpop.f32.mrf.mxu1  ;;  %v757_v9 = vadd.f32 %v756_v54, %v716_v6 }
 0x12d   :  { %v718_v55 = vpop.f32.mrf.mxu0  ;;  %v1167_v56 = vld [vmem:[%s1532_s4] ss:$0 sm:$0xff] }
 0x12e   :  { %v759_v57 = vpop.f32.mrf.mxu1 }
 0x130   :  { %v836_v58 = vpop.f32.mrf.mxu1 }
 0x132   :  { %v838_v59 = vpop.f32.mrf.mxu1 }
 0x134   :  { %v840_v60 = vpop.f32.mrf.mxu1 }
 0x136   :  { %v841_v61 = vpop.f32.mrf.mxu1 }
 0x167   :  { %v795_v8 = vpop.f32.mrf.mxu0 }
 0x168   :  { %v796_v10 = vadd.f32 %v795_v8, %v755_v7 }
 0x169   :  { %v797_v11 = vpop.f32.mrf.mxu0 }
 0x16a   :  { %v837_v12 = vadd.f32 %v836_v58, %v796_v10  ;;  %v798_v13 = vadd.f32 %v797_v11, %v757_v9 }
 0x16b   :  { %v799_v14 = vpop.f32.mrf.mxu0 }
 0x16c   :  { %v839_v15 = vadd.f32 %v838_v59, %v798_v13  ;;  %v845_v16 = vmul.f32 0.02, %v837_v12  ;;  %vm843_vm1 = vcmp.ge.f32.partialorder %v837_v12, 0.0 }
 0x16d   :  { %v800_v17 = vpop.f32.mrf.mxu0 }
 0x16e   :  { %vm844_vm2 = vcmp.ge.f32.partialorder %v839_v15, 0.0  ;;  %v846_v18 = vmul.f32 0.02, %v839_v15  ;;  %v847_v19 = vsel %vm843_vm1, %v837_v12, %v845_v16 }
 0x16f   :  { %v852_v23 = vmul.f32 %v847_v19, %v847_v19 }
 0x170   :  { %v848_v20 = vsel %vm844_vm2, %v839_v15, %v846_v18 }
 0x171   :  { %v849_v21 = vadd.f32 %v848_v20, %v847_v19  ;;  %v853_v22 = vmul.f32 %v848_v20, %v848_v20 }
 0x173   :  { %850 = vadd.xlane.f32.xlu0 %v849_v21  ;;  %v854_v24 = vadd.f32 %v853_v22, %v852_v23 }
 0x177   :  { %855 = vadd.xlane.f32.xlu0 %v854_v24 }
 0x1fc   :  { %v851_v40 = vpop.xlane.xlu0 %850 }
 0x1fd   :  { %v857_v41 = vmul.f32 0.005, %v851_v40 }
 0x1ff   :  { %v859_v43 = vmul.f32 %v857_v41, %v857_v41  ;;  %v864_v48 = vsub.f32 %v847_v19, %v857_v41  ;;  %v865_v49 = vsub.f32 %v848_v20, %v857_v41 }
 0x200   :  { %v856_v42 = vpop.xlane.xlu0 %855 }
 0x201   :  { %v858_v44 = vmul.f32 0.005, %v856_v42 }
 0x203   :  { %v860_v45 = vsub.f32 %v858_v44, %v859_v43 }
 0x205   :  { %v861_v46 = vmax.f32 %v860_v45, 0.0 }
 0x207   :  { %v862_v47 = vadd.f32 1e-05, %v861_v46 }
 0x209   :  { %1378 = vrsqrt.f32 %v862_v47 }
 0x216   :  { %v1379_v50 = vpop.eup %1378 }
 0x217   :  { %v867_v51 = vmul.f32 %v1379_v50, %v865_v49  ;;  %v866_v52 = vmul.f32 %v1379_v50, %v864_v48 }
 0x219   :  { %v869_v53 = vpack.c.bf16 %v867_v51, %v867_v51  ;;  %v868_v54 = vpack.c.bf16 %v866_v52, %v866_v52 }
 0x21b   :  { %1037 = vmatprep.mubr.bf16.mxu1 %v869_v53 }
 0x21c   :  { %1038 = vmatmul.mubr.bf16.vlgmr.msra.gmra.mxu1 %v868_v54 }
 0x2dc   :  { %v1200_v55 = vpop.f32.mrf.mxu1 }
 0x2de   :  { %v1201_v57 = vpop.f32.mrf.mxu1 }
 0x2df   :  { %v1202_v58 = vadd.f32 %v1201_v57, %v1200_v55 }
 0x2e0   :  { %v1203_v59 = vpop.f32.mrf.mxu1 }
 0x2e1   :  { %v1040_v60 = vadd.f32 %v1202_v58, %v1167_v56 }
 0x2e2   :  { %v1204_v61 = vpop.f32.mrf.mxu1 }
 0x2e3   :  { %v1045_v62 = vsub.f32 0.0, %v1040_v60 }
 0x2e5   :  { %v1046_v63 = vmul.f32 1.442695, %v1045_v62 }
 0x2e7   :  { %1380 = vpow2.f32 %v1046_v63 }
 0x2f4   :  { %v1381_v0 = vpop.eup %1380 }
 0x2f5   :  { %v1048_v1 = vadd.f32 1.0, %v1381_v0 }
 0x2f7   :  { %1382 = vrcp.f32 %v1048_v1 }
 0x304   :  { %v1383_v2 = vpop.eup %1382 }
 0x305   :  { %v1050_v3 = vpack.c.bf16 %v1383_v2, %v1383_v2 }
 0x307   :  { %1051 = vst [vmem:[#allocation8] sm:$0xf] %v1050_v3 }
 0x308   :  { %1455 = shalt.err (!%p1452_p5)
}
 0x309   :  { %1061 = dma.vmem_to_hbm [thread:$0]  %s1059_s13, 64, %s1533_s5, [#allocation4]  }
 0x30a   :  { %1468 = dma.done.wait [#allocation4], 64  }
 0x30b   :  { %1469 = vsyncadd [#allocation4], 4294967232 }
 0x30c   :  { %1065 = vsyncpa [#allocation3], 1 }
 0x30d   :  { %1066 = vsyncpa [#allocation6], 1 }
 0x30e   :  { %1067 = vsyncpa [#allocation4], 1 }

</bundles_post_ra>
